<compile_context>
chip_gen: v5e
topology: v5e:2x2
jax: 0.10.0
libtpu: 0.0.40
codegen_flags: <defaults>
</compile_context>

<pallas_src>
import functools

import jax
import jax.numpy as jnp
from jax.experimental import pallas as pl
from jax.experimental.pallas import tpu as pltpu


def _pos_embed_kernel(x_ref, pos_ref, y_ref):
    # x_ref:   (Bt, N, D)  VMEM
    # pos_ref: (1,  N, D)  VMEM   (broadcast over the batch-tile axis)
    # y_ref:   (Bt, N, D)  VMEM
    # Pure VPU add; (1, N, D) broadcasts against (Bt, N, D).
    y_ref[...] = x_ref[...] + pos_ref[...]


def _choose_batch_tile(B, N, D, itemsize, vmem_budget_bytes=4 << 20):
    """Pick a batch tile that (a) divides B, (b) keeps one block within a VMEM
    budget (double-buffered x + y + pos must fit comfortably under the scoped
    limit), and (c) leaves a grid of length >= 2 when B >= 2 so both v7x
    TensorCores get work."""
    row_bytes = max(1, N * D * itemsize)
    bt = max(1, vmem_budget_bytes // row_bytes)
    if B >= 2:
        bt = min(bt, (B + 1) // 2)      # keep grid length >= 2 for megacore
    bt = min(bt, B)
    while B % bt:                        # largest divisor of B not above bt
        bt -= 1
    return bt


def positional_embedding_1d(x, pos_embedding):
    """x: (B, N, D); pos_embedding: (1, N, D).  Returns x + pos_embedding."""
    B, N, D = x.shape
    assert pos_embedding.shape == (1, N, D), "pos_embedding must be (1, seq_len, dim)"
    pos = pos_embedding.astype(x.dtype)

    bt = _choose_batch_tile(B, N, D, jnp.dtype(x.dtype).itemsize)
    grid = (B // bt,)

    return pl.pallas_call(
        _pos_embed_kernel,
        out_shape=jax.ShapeDtypeStruct((B, N, D), x.dtype),
        grid_spec=pltpu.PrefetchScalarGridSpec(
            num_scalar_prefetch=0,
            grid=grid,
            in_specs=[
                # Full-extent (N, D) rows, Bt batch rows per step.
                pl.BlockSpec((bt, N, D), lambda i: (i, 0, 0)),
                # Constant block: same positional-embedding tile every step.
                pl.BlockSpec((1, N, D), lambda i: (0, 0, 0)),
            ],
            out_specs=pl.BlockSpec((bt, N, D), lambda i: (i, 0, 0)),
        ),
        compiler_params=pltpu.CompilerParams(
            dimension_semantics=("parallel",),
        ),
    )(x, pos)


def positional_embedding_1d_reference(x, pos_embedding):
    """Pure-JAX reference mirroring the PyTorch forward exactly."""
    return x + pos_embedding


if __name__ == "__main__":
    B, N, D = 2, 8, 32   # batch, seq_len, emb_dim

    key = jax.random.PRNGKey(0)
    kx, kp = jax.random.split(key, 2)
    x = jax.random.normal(kx, (B, N, D), dtype=jnp.float32)
    # The module initializes pos_embedding to zeros; use a random value here so
    # the add is actually exercised (this is just the learned parameter value).
    pos_embedding = 0.1 * jax.random.normal(kp, (1, N, D), dtype=jnp.float32)

    y = positional_embedding_1d(x, pos_embedding)
    y = jax.block_until_ready(y)

    y_ref = positional_embedding_1d_reference(x, pos_embedding)
    assert y.shape == y_ref.shape, "shape mismatch"
    assert jnp.allclose(y, y_ref, atol=1e-6, rtol=1e-6), "output mismatch"

    print("KERNEL_OK")
</pallas_src>

<mosaic_0001>
module attributes {stable_mosaic.version = 11 : i64} {
  func.func @_pos_embed_kernel(%arg0: i32, %arg1: memref<1x8x32xf32, #tpu.memory_space<vmem>>, %arg2: memref<1x8x32xf32, #tpu.memory_space<vmem>>, %arg3: memref<1x8x32xf32, #tpu.memory_space<vmem>>) attributes {dimension_semantics = [#tpu.dimension_semantics<parallel>], iteration_bounds = array<i64: 2>, scalar_prefetch = 0 : i64, scratch_operands = 0 : i64, tpu.core_type = #tpu.core_type<tc>, window_params = [{transform_indices = @transform_0, window_bounds = array<i64: 1, 8, 32>}, {pipeline_mode = #tpu.pipeline_mode<synchronous>, transform_indices = @transform_1, window_bounds = array<i64: 1, 8, 32>}, {transform_indices = @transform_2, window_bounds = array<i64: 1, 8, 32>}]} {
    %c0 = arith.constant 0 : index
    %c0_0 = arith.constant 0 : index
    %c0_1 = arith.constant 0 : index
    %0 = vector.load %arg1[%c0, %c0_0, %c0_1] : memref<1x8x32xf32, #tpu.memory_space<vmem>>, vector<1x8x32xf32>
    %c0_2 = arith.constant 0 : index
    %c0_3 = arith.constant 0 : index
    %c0_4 = arith.constant 0 : index
    %1 = vector.load %arg2[%c0_2, %c0_3, %c0_4] : memref<1x8x32xf32, #tpu.memory_space<vmem>>, vector<1x8x32xf32>
    %2 = arith.addf %0, %1 : vector<1x8x32xf32>
    %c0_5 = arith.constant 0 : index
    %c0_6 = arith.constant 0 : index
    %c0_7 = arith.constant 0 : index
    %3 = vector.load %arg3[%c0_5, %c0_6, %c0_7] : memref<1x8x32xf32, #tpu.memory_space<vmem>>, vector<1x8x32xf32>
    tpu.vector_store %arg3[%c0_5, %c0_6, %c0_7], %2 {strides = array<i32>} : memref<1x8x32xf32, #tpu.memory_space<vmem>>, vector<1x8x32xf32>,
    return
  }
  func.func @transform_0(%arg0: i32) -> (i32, i32, i32) {
    %c0_i32 = arith.constant 0 : i32
    %c0_i32_0 = arith.constant 0 : i32
    %c0_i32_1 = arith.constant 0 : i32
    return %arg0, %c0_i32, %c0_i32_0 : i32, i32, i32
  }
  func.func @transform_1(%arg0: i32) -> (i32, i32, i32) {
    %c0_i32 = arith.constant 0 : i32
    %c0_i32_0 = arith.constant 0 : i32
    %c0_i32_1 = arith.constant 0 : i32
    %c0_i32_2 = arith.constant 0 : i32
    return %c0_i32, %c0_i32_0, %c0_i32_1 : i32, i32, i32
  }
  func.func @transform_2(%arg0: i32) -> (i32, i32, i32) {
    %c0_i32 = arith.constant 0 : i32
    %c0_i32_0 = arith.constant 0 : i32
    %c0_i32_1 = arith.constant 0 : i32
    return %arg0, %c0_i32, %c0_i32_0 : i32, i32, i32
  }
}

</mosaic_0001>

<bundles_post_ra>
// kernel: tpu_custom_call.1
= control target key start
LH: loop header
LB: loop body
LE: loop exit
PB: predicated region body
PF: predicated region fallthrough
CT: control target
= control target key end

     0   :  { %7 = vsyncpa [#allocation3], 0  ;;  %s634_s0 = inlined_call_operand.hbm [shape: f32[2,8,32], index: 0, kind: input, shape index: {}]   ;;  %s635_s1 = inlined_call_operand.hbm [shape: f32[1,8,32], index: 1, kind: input, shape index: {}]   ;;  %s636_s2 = inlined_call_operand.hbm [shape: f32[2,8,32], index: 2, kind: output, shape index: {}]  }
   0x1   :  { %9 = vsyncpa [#allocation3 + $0x1], 0 }
   0x2   :  { %10 = vsyncpa [#allocation6], 0 }
   0x3   :  { %11 = vsyncpa [#allocation4], 0 }
   0x4   :  { %13 = vsyncpa [#allocation4 + $0x1], 0  ;;  %s496_s9 = smov 0   ;;  %s498_s10 = smov 0  }
   0x5   :  { %s500_s11 = smov 0   ;;  %s502_s12 = smov 0  }
   0x6 LB: > { %s517_s13 = sadd.s32 4294967295, %s478_s12   ;;  %s277_s14 = sadd.s32 4294967294, %s478_s12   ;;  %s478_s12 = sphi %s502_s12, %s646_s12   ;;  %s474_s11 = sphi %s500_s11, %s645_s11   ;;  %s470_s10 = sphi %s498_s10, %s644_s10   ;;  %s466_s9 = sphi %s496_s9, %s643_s9  }
   0x7   : > { %p39_p0 = scmp.ne.s32.totalorder %s470_s10, %s466_s9  ;;  %p40_p1 = scmp.eq.s32.totalorder %s517_s13, 0 }
   0x8   : > { %p84_p2 = scmp.eq.s32.totalorder %s517_s13, 1  ;;  %p90_p3 = scmp.eq.s32.totalorder %s277_s14, 1 }
   0x9   : > { %p526_p4 = por %p40_p1, %p39_p0  ;;  %p278_p5 = scmp.ge.s32.totalorder %s478_s12, 1 }
   0xa   : > { %p531_p6 = por %p90_p3, %p39_p0  ;;  %p97_p7 = scmp.lt.s32.totalorder %s478_s12, 3 }
   0xb   : > { %s109_s19 = sshll.u32 %s635_s1, 4  ;;  %s480_s21 = smov [#allocation5]   ;;  %s110_s19 = int_to_ptr.hbm [resolvable:$true] %s109_s19 }
   0xc   : > { %p539_p8 = pnand %p278_p5, %p97_p7  ;;  %s111_s22 = sshll.u32 %s480_s21, 4  ;;  %s112_s22 = int_to_ptr.vmem [resolvable:$true] %s111_s22 }
   0xd   : > { %s549_s23 = sadd.s32 1, %s478_s12   ;;  %s26_s24 = sadd.s32 1, %s474_s11 }
   0xe   : > { %p299_p10 = pneg %p539_p8  ;;  %s23_s25 = ssub.s32 %s478_s12, %s549_s23 }
   0xf   : > { %p24_p12 = scmp.eq.s32.totalorder %s23_s25, 0  ;;  %p33_p13 = scmp.ne.s32.totalorder %s474_s11, %s470_s10 }
  0x10   : > { %p300_p11 = pnand %p299_p10, %p40_p1  ;;  %p34_p0 = scmp.eq.s32.totalorder %s478_s12, 0 }
  0x11   : > { %s558_s26 = scalar_select %p24_p12, %s474_s11, %s26_s24  }
  0x12   : > { %302 = dma.hbm_to_vmem [thread:$0]  (!%p300_p11), %s110_s19, 128, %s112_s22, [#allocation6]  }
  0x13   : > { %p562_p3 = por %p84_p2, %p33_p13  ;;  %p312_p5 = scmp.lt.s32.totalorder %s478_s12, 2 }
  0x14   : > { %s122_s28 = sand.u32 1, %s474_s11   ;;  %s282_s29 = sshll.u32 %s478_s12, 3 }
  0x15   : > { %p35_p7 = por %p34_p0, %p33_p13  ;;  %s281_s30 = sshll.u32 %s122_s28, 3 }
  0x16   : > { %s130_s5 = scalar_lea.hbm %s634_s0, %s282_s29  ;;  %s126_s7 = scalar_lea.vmem [#allocation2], %s281_s30 }
  0x17   : > { %s132_s6 = sshll.u32 %s130_s5, 4  ;;  %s134_s8 = sshll.u32 %s126_s7, 4  ;;  %s133_s6 = int_to_ptr.hbm [resolvable:$true] %s132_s6  ;;  %s135_s8 = int_to_ptr.vmem [resolvable:$true] %s134_s8 }
  0x18   : > { %p572_p10 = pnand %p312_p5, %p35_p7  ;;  %s123_s17 = scalar_lea.sflag [#allocation3], %s122_s28 }
  0x19   : > { %s378_s18 = sshra.s32 %s133_s6, 4  ;;  %s385_s24 = scalar_lea.hbm %s634_s0, 16  ;;  %s379_s18 = int_to_ptr.hbm [resolvable:$true] %s378_s18 }
  0x1a   : > { %s380_s19 = scalar_lea.hbm %s379_s18, 8  ;;  %p382_p11 = pneg %p572_p10 }
  0x1b   : > { %p381_p2 = scmp.ne.s32.totalorder %s379_s18, %s380_s19  ;;  %p386_p0 = scmp.lt.s32.totalorder %s379_s18, %s634_s0 }
  0x1c   : > { %p387_p5 = scmp.lt.s32.totalorder %s385_s24, %s380_s19 }
  0x1d   : > { %p383_p12 = pnand %p382_p11, %p381_p2 }
  0x1e   : > { %p388_p7 = por %p387_p5, %p386_p0 }
  0x1f   : > { %p384_p13 = pneg %p383_p12 }
  0x21   : > { %p389_p9 = pnand %p388_p7, %p384_p13 }
  0x23   : > { %392 = shalt.err (!%p389_p9)
}
  0x24   : > { %306 = dma.hbm_to_vmem [thread:$0]  (!%p572_p10), %s133_s6, 128, %s135_s8, %s123_s17  }
  0x25   : > { %143 = sbr.rel (%p539_p8) target bundleno = 60 (0x3c), region = 28  ;;  %s589_s28 = sand.u32 (!%p539_p8), 1, %s470_s10  }
  0x26   : > { %s284_s30 = sshll.u32 (!%p539_p8), %s589_s28, 3  ;;  %s146_s3 = scalar_lea.sflag (!%p539_p8), [#allocation3], %s589_s28 }
  0x27   : > { %s149_s4 = scalar_lea.vmem (!%p539_p8), [#allocation2], %s284_s30 }
  0x2a   : > { %453 = dma.done.wait (%p526_p4), %s146_s3, 128  }
  0x2b   : > { %455 = vsyncadd (%p526_p4), %s146_s3, 4294967168 }
  0x2c   : > { %457 = dma.done.wait (%p40_p1), [#allocation6], 128  }
  0x2d   : > { %459 = vsyncadd (%p40_p1), [#allocation6], 4294967168  ;;  %s288_s20 = sshll.u32 %s517_s13, 3  ;;  %s175_s8 = scalar_lea.vmem [#allocation7], %s284_s30  ;;  %v176_v0 = vld [vmem:[%s149_s4] sm:$0xff]  ;;  %v177_v1 = vld [vmem:[#allocation5] sm:$0xff] }
  0x2e   : > { %s192_s7 = scalar_lea.hbm %s636_s2, %s288_s20  ;;  %s194_s14 = sshll.u32 %s175_s8, 4  ;;  %vm179_vm0 = vcmask 261120   ;;  %v178_v2 = vadd.f32 %v177_v1, %v176_v0  ;;  %s195_s14 = int_to_ptr.vmem [resolvable:$true] %s194_s14 }
  0x2f   : > { %s196_s17 = sshll.u32 %s192_s7, 4  ;;  %s182_s15 = scalar_lea.sflag [#allocation4], %s589_s28  ;;  %s197_s17 = int_to_ptr.hbm [resolvable:$true] %s196_s17 }
  0x30   : > { %180 = vst.msk [vmem:[%s175_s8] sm:$0xff] %vm179_vm0, %v178_v2  ;;  %s422_s18 = sshra.s32 %s197_s17, 4  ;;  %s428_s22 = scalar_lea.hbm %s636_s2, 16  ;;  %s423_s18 = int_to_ptr.hbm [resolvable:$true] %s422_s18 }
  0x31   : > { %s424_s19 = scalar_lea.hbm %s423_s18, 8  ;;  %p429_p9 = scmp.lt.s32.totalorder %s423_s18, %s636_s2 }
  0x32   : > { %p425_p1 = scmp.ne.s32.totalorder %s423_s18, %s424_s19  ;;  %p430_p10 = scmp.lt.s32.totalorder %s428_s22, %s424_s19 }
  0x34   : > { %p426_p4 = pnand %p425_p1, %p562_p3  ;;  %p431_p2 = por %p430_p10, %p429_p9 }
  0x36   : > { %p427_p8 = pneg %p426_p4 }
  0x38   : > { %p432_p11 = pnand %p431_p2, %p427_p8 }
  0x3a   : > { %435 = shalt.err (!%p432_p11)
}
  0x3b   : > { %297 = dma.vmem_to_hbm [thread:$0]  (%p562_p3), %s195_s14, 128, %s197_s17, %s182_s15  }
  0x3c PF: > { %s208_s29 = sand.u32 1, %s466_s9   ;;  %p642_p12 = scmp.ge.s32.totalorder %s478_s12, 2 }
  0x3d   : > { %s209_s28 = scalar_lea.sflag [#allocation4], %s208_s29 }
  0x3e   : > { %p308_p13 = pnand %p642_p12, %p531_p6 }
  0x40   : > { %p309_p0 = pneg %p308_p13 }
  0x42   : > { %461 = dma.done.wait (%p309_p0), %s209_s28, 128  }
  0x43   : > { %463 = vsyncadd (%p309_p0), %s209_s28, 4294967168  ;;  %p16_p5 = scmp.ge.s32.totalorder %s549_s23, 4   ;;  %s643_s9 = smov %s470_s10 }
  0x44   : > { %s644_s10 = smov %s474_s11  ;;  %s645_s11 = smov %s558_s26 }
  0x45   : > { %s646_s12 = smov %s549_s23  ;;  %18 = sbr.rel (!%p16_p5) target bundleno = 6 (0x6), region = 77 }
  0x4a   :  { %215 = vsyncpa [#allocation3], 1 }
  0x4b   :  { %217 = vsyncpa [#allocation3 + $0x1], 1 }
  0x4c   :  { %218 = vsyncpa [#allocation6], 1 }
  0x4d   :  { %219 = vsyncpa [#allocation4], 1 }
  0x4e   :  { %221 = vsyncpa [#allocation4 + $0x1], 1 }

</bundles_post_ra>
